<compile_context>
chip_gen: v5e
topology: v5e:2x2
jax: 0.10.0
libtpu: 0.0.40
codegen_flags: <defaults>
</compile_context>

<pallas_src>
import functools

import jax
import jax.numpy as jnp
from jax.experimental import pallas as pl
from jax.experimental.pallas import tpu as pltpu


def _normalize_kernel(params_ref, x_ref, o_ref, *, tm):
    # params_ref: (2, R_pad, 1) f32, resident (same block every grid step).
    #   [0] = per-row mean, [1] = per-row 1/sd   (row = one (b, c) pair).
    # x_ref / o_ref: (tm, tn) data tile.
    row0 = pl.program_id(0) * tm
    if tm % 8 == 0:                       # trace-time check; tm is a Python int
        row0 = pl.multiple_of(row0, 8)
    p = params_ref[:, pl.ds(row0, tm), :]  # (2, tm, 1) f32
    mean = p[0]                            # (tm, 1)
    inv_sd = p[1]                          # (tm, 1)
    x = x_ref[...].astype(jnp.float32)     # f32 compute (safe on v5e, no bf16 VPU)
    o_ref[...] = ((x - mean) * inv_sd).astype(o_ref.dtype)


def _vmem_budget():
    """Per-tile byte budget and physical VMEM capacity, device-derived."""
    try:
        vmem_cap = int(pltpu.get_tpu_info().vmem_capacity_bytes)
    except Exception:
        vmem_cap = 64 * 1024 * 1024  # conservative fallback (v7x per-core VMEM)
    # ~vmem/16 per tile keeps 2x(in) + 2x(out) double-buffered tiles well under
    # half of VMEM on every generation: 8 MiB tiles on v5e/v6e, 4 MiB on v7x.
    budget = min(8 * 1024 * 1024, max(2 * 1024 * 1024, vmem_cap // 16))
    return budget, vmem_cap


def _pick_tiles(rows, cols, itemsize, budget_bytes):
    """Pick a lane-dense (tm, tn) tile of roughly `budget_bytes`."""
    # Lane (last) dim: prefer the full spatial extent (contiguous HBM rows,
    # simplest DMA descriptors, unmasked lane-dense stores). Only split lanes
    # when a single 8-row slab of full width already exceeds the budget.
    if cols <= 128 or 8 * cols * itemsize <= budget_bytes:
        tn = cols
    else:
        tn = (budget_bytes // (8 * itemsize)) // 128 * 128
        tn = min(cols, max(512, tn))
    # Sublane (second-to-last) dim: multiple of 8, unless one block covers the
    # full row extent (block dim equal to the array dim is always legal).
    max_rows = max(8, ((budget_bytes // (tn * itemsize)) // 8) * 8)
    tm = rows if rows <= max_rows else max_rows
    # v7x has 2 TensorCores: when the problem is big enough to matter, make
    # sure the (parallel) row axis has >= 2 blocks so both cores stream.
    big_enough = rows * cols * itemsize >= 8 * 1024 * 1024
    if big_enough and rows >= 16 and tm >= rows:
        half = (rows + 1) // 2
        tm = ((half + 7) // 8) * 8
    if tm < rows:
        tm = max(8, (tm // 8) * 8)
    return tm, tn


def normalize_layer(x, means, sds, *, out_dtype=None, donate_x=False):
    """(x - means[c]) / sds[c] applied per channel of an NCHW tensor."""
    B, C, H, W = x.shape
    assert means.shape == (C,) and sds.shape == (C,)
    out_dtype = jnp.dtype(x.dtype if out_dtype is None else out_dtype)

    R, N = B * C, H * W
    x2 = x.reshape(R, N)

    budget, vmem_cap = _vmem_budget()
    tm, tn = _pick_tiles(R, N, x2.dtype.itemsize, budget)
    grid = (pl.cdiv(R, tm), pl.cdiv(N, tn))

    # Per-row parameters (mean, 1/sd), reciprocal done once on C values in the
    # wrapper so the kernel is only a VPU subtract + multiply. Padded so every
    # row block slices in-bounds; stacked into one tiny resident array.
    R_pad = grid[0] * tm
    row_mean = jnp.tile(means.astype(jnp.float32), B)
    row_inv_sd = jnp.tile(1.0 / sds.astype(jnp.float32), B)
    if R_pad != R:
        row_mean = jnp.pad(row_mean, (0, R_pad - R))
        row_inv_sd = jnp.pad(row_inv_sd, (0, R_pad - R), constant_values=1.0)
    params = jnp.stack([row_mean, row_inv_sd], axis=0).reshape(2, R_pad, 1)

    # Pipeline VMEM: double-buffered in/out data tiles + resident params.
    in_tile = tm * tn * x2.dtype.itemsize
    out_tile = tm * tn * out_dtype.itemsize
    needed = 2 * in_tile + 2 * out_tile + params.size * 4 + (2 << 20)
    vmem_limit = int(min(vmem_cap, max(needed, 16 * 1024 * 1024)))

    out = pl.pallas_call(
        functools.partial(_normalize_kernel, tm=tm),
        out_shape=jax.ShapeDtypeStruct((R, N), out_dtype),
        grid=grid,
        in_specs=[
            # Whole (tiny) param array; constant block index -> DMA'd once.
            pl.BlockSpec((2, R_pad, 1), lambda i, j: (0, 0, 0)),
            pl.BlockSpec((tm, tn), lambda i, j: (i, j)),     # data tile
        ],
        out_specs=pl.BlockSpec((tm, tn), lambda i, j: (i, j)),
        compiler_params=pltpu.CompilerParams(
            dimension_semantics=("parallel", "parallel"),
            vmem_limit_bytes=vmem_limit,
        ),
        # Reuse x's HBM buffer for the output only if the caller donates x.
        input_output_aliases=(
            {1: 0} if (donate_x and out_dtype == x.dtype) else {}
        ),
    )(params, x2)

    return out.reshape(B, C, H, W)


if __name__ == "__main__":
    # Deterministic "parameters" (one value per channel, like the module).
    C = 4
    means = jnp.array([0.485, 0.456, 0.406, 0.500], dtype=jnp.float32)
    sds = jnp.array([0.229, 0.224, 0.225, 0.250], dtype=jnp.float32)

    # Small NCHW input, deterministic.
    key = jax.random.PRNGKey(0)
    x = jax.random.uniform(key, (2, C, 16, 16), dtype=jnp.float32)

    out = jax.block_until_ready(normalize_layer(x, means, sds))
    ref = (x - means[None, :, None, None]) / sds[None, :, None, None]
    assert out.shape == x.shape and out.dtype == x.dtype
    assert jnp.allclose(out, ref, atol=1e-6, rtol=1e-5)

    # Moderate shape to exercise the multi-block (>= 2 row blocks) path.
    x_big = jax.random.uniform(
        jax.random.PRNGKey(1), (8, C, 256, 256), dtype=jnp.float32
    )
    out_big = jax.block_until_ready(normalize_layer(x_big, means, sds))
    ref_big = (x_big - means[None, :, None, None]) / sds[None, :, None, None]
    assert jnp.allclose(out_big, ref_big, atol=1e-6, rtol=1e-5)

    print("KERNEL_OK")
</pallas_src>

<mosaic_0001>
module attributes {stable_mosaic.version = 11 : i64} {
  func.func @_normalize_kernel(%arg0: i32, %arg1: i32, %arg2: memref<2x8x1xf32, #tpu.memory_space<vmem>>, %arg3: memref<8x256xf32, #tpu.memory_space<vmem>>, %arg4: memref<8x256xf32, #tpu.memory_space<vmem>>) attributes {dimension_semantics = [#tpu.dimension_semantics<parallel>, #tpu.dimension_semantics<parallel>], iteration_bounds = array<i64: 1, 1>, scalar_prefetch = 0 : i64, scratch_operands = 0 : i64, tpu.core_type = #tpu.core_type<tc>, window_params = [{pipeline_mode = #tpu.pipeline_mode<synchronous>, transform_indices = @transform_0, window_bounds = array<i64: 2, 8, 1>}, {transform_indices = @transform_1, window_bounds = array<i64: 8, 256>}, {transform_indices = @transform_2, window_bounds = array<i64: 8, 256>}]} {
    %c8_i32 = arith.constant 8 : i32
    %0 = arith.muli %arg0, %c8_i32 : i32
    %1 = tpu.assume_multiple %0, 8 : i32
    %c0 = arith.constant 0 : index
    %2 = arith.index_cast %1 : i32 to index
    %c0_0 = arith.constant 0 : index
    %3 = vector.load %arg2[%c0, %2, %c0_0] : memref<2x8x1xf32, #tpu.memory_space<vmem>>, vector<2x8x1xf32>
    %4 = vector.extract_strided_slice %3 {offsets = [0, 0, 0], sizes = [1, 8, 1], strides = [1, 1, 1]} : vector<2x8x1xf32> to vector<1x8x1xf32>
    %5 = vector.shape_cast %4 : vector<1x8x1xf32> to vector<8x1xf32>
    %6 = vector.extract_strided_slice %3 {offsets = [1, 0, 0], sizes = [1, 8, 1], strides = [1, 1, 1]} : vector<2x8x1xf32> to vector<1x8x1xf32>
    %7 = vector.shape_cast %6 : vector<1x8x1xf32> to vector<8x1xf32>
    %c0_1 = arith.constant 0 : index
    %c0_2 = arith.constant 0 : index
    %8 = vector.load %arg3[%c0_1, %c0_2] : memref<8x256xf32, #tpu.memory_space<vmem>>, vector<8x256xf32>
    %9 = vector.broadcast %5 : vector<8x1xf32> to vector<8x256xf32>
    %10 = arith.subf %8, %9 : vector<8x256xf32>
    %11 = vector.broadcast %7 : vector<8x1xf32> to vector<8x256xf32>
    %12 = arith.mulf %10, %11 : vector<8x256xf32>
    %c0_3 = arith.constant 0 : index
    %c0_4 = arith.constant 0 : index
    %13 = vector.load %arg4[%c0_3, %c0_4] : memref<8x256xf32, #tpu.memory_space<vmem>>, vector<8x256xf32>
    tpu.vector_store %arg4[%c0_3, %c0_4], %12 {strides = array<i32>} : memref<8x256xf32, #tpu.memory_space<vmem>>, vector<8x256xf32>,
    return
  }
  func.func @transform_0(%arg0: i32, %arg1: i32) -> (i32, i32, i32) {
    %c0_i32 = arith.constant 0 : i32
    %c0_i32_0 = arith.constant 0 : i32
    %c0_i32_1 = arith.constant 0 : i32
    %c0_i32_2 = arith.constant 0 : i32
    return %c0_i32, %c0_i32_0, %c0_i32_1 : i32, i32, i32
  }
  func.func @transform_1(%arg0: i32, %arg1: i32) -> (i32, i32) {
    %c0_i32 = arith.constant 0 : i32
    return %arg0, %arg1 : i32, i32
  }
  func.func @transform_2(%arg0: i32, %arg1: i32) -> (i32, i32) {
    %c0_i32 = arith.constant 0 : i32
    return %arg0, %arg1 : i32, i32
  }
}

</mosaic_0001>

<bundles_post_ra>
// kernel: tpu_custom_call.1
= control target key start
LH: loop header
LB: loop body
LE: loop exit
PB: predicated region body
PF: predicated region fallthrough
CT: control target
= control target key end

     0   :  { %v79_v1 = vmov 0   ;;  %s111_s0 = inlined_call_operand.vmem [shape: f32[2,8,1], index: 0, kind: input, shape index: {}]   ;;  %s112_s1 = inlined_call_operand.vmem [shape: f32[8,256], index: 1, kind: input, shape index: {}]   ;;  %s113_s2 = inlined_call_operand.hbm [shape: f32[8,256], index: 2, kind: output, shape index: {}]  }
   0x1   :  { %v14_v0 = vld [vmem:[%s111_s0] sm:$0xff]  ;;  %52 = vset.pattern.permute.xlu0 %v79_v1 }
   0x2   :  { %7 = vsyncpa [#allocation3], 0  ;;  %20 = vperm.xlu0 %52, %v14_v0   ;;  %v15_v2 = vld [vmem:[%s111_s0 + $0x8] sm:$0xff]  ;;  %v16_v4 = vld [vmem:[%s112_s1] sm:$0xff]  ;;  %s80_s17 = smov [#allocation2]   ;;  %s41_s21 = sshll.u32 %s113_s2, 4  ;;  %s42_s21 = int_to_ptr.hbm [resolvable:$true] %s41_s21 }
   0x3   :  { %v17_v5 = vld [vmem:[%s112_s1 + $0x8] sm:$0xff]  ;;  %s39_s18 = sshll.u32 %s80_s17, 4  ;;  %s40_s18 = int_to_ptr.vmem [resolvable:$true] %s39_s18 }
   0xa   :  { %27 = vperm.xlu0 %52, %v15_v2  }
  0x74   :  { %v21_v3 = vpop.permute.xlu0 %20 }
  0x75   :  { %v23_v6 = vsub.f32 %v16_v4, %v21_v3  ;;  %v24_v7 = vsub.f32 %v17_v5, %v21_v3 }
  0x7c   :  { %v28_v8 = vpop.permute.xlu0 %27 }
  0x7d   :  { %v30_v9 = vmul.f32 %v28_v8, %v23_v6  ;;  %v31_v10 = vmul.f32 %v28_v8, %v24_v7 }
  0x7f   :  { %32 = vst [vmem:[#allocation2] sm:$0xff] %v30_v9 }
  0x80   :  { %33 = vst [vmem:[#allocation2 + $0x8] sm:$0xff] %v31_v10 }
  0x81   :  { %44 = dma.vmem_to_hbm [thread:$0]  %s40_s18, 256, %s42_s21, [#allocation3]  }
  0x82   :  { %77 = dma.done.wait [#allocation3], 256  }
  0x83   :  { %78 = vsyncadd [#allocation3], 4294967040 }
  0x84   :  { %49 = vsyncpa [#allocation3], 1 }

</bundles_post_ra>
